<compile_context>
chip_gen: v6e
topology: v6e:2x2x1
jax: 0.10.0
libtpu: 0.0.40
codegen_flags: <defaults>
</compile_context>

<pallas_src>
import functools

import jax
import jax.numpy as jnp
from jax.experimental import pallas as pl
from jax.experimental.pallas import tpu as pltpu


def _modified_mlp_kernel(n_hidden, layer_width, compute_dtype, *refs):
    # refs = (x_aug, W_fused,
    #         Ws[1], bs[1], ..., Ws[n_layers-2], bs[n_layers-2],
    #         W_last, b_last, out_ref)
    x_ref, wf_ref = refs[0], refs[1]
    hidden_refs = refs[2:2 + 2 * n_hidden]
    wlast_ref = refs[2 + 2 * n_hidden]
    blast_ref = refs[3 + 2 * n_hidden]
    out_ref = refs[-1]

    L = layer_width
    x = x_ref[...].astype(compute_dtype)             # (in+1, Bt), last row = 1
    wf = wf_ref[...].astype(compute_dtype)           # (3L, in+1), bias folded

    # One fused matmul + one fused tanh pass for u, v and the first layer's z.
    uvz = jnp.tanh(jnp.dot(wf, x, preferred_element_type=jnp.float32))  # (3L, Bt)
    u = uvz[:L]
    v = uvz[L:2 * L]
    z = uvz[2 * L:]

    d = v - u                                        # hoisted once
    h = u + z * d                                    # == (1 - z) * u + z * v

    # Remaining hidden layers (unrolled; n_hidden is a Python int).
    for i in range(n_hidden):
        W = hidden_refs[2 * i][...].astype(compute_dtype)     # (L, L)
        b = hidden_refs[2 * i + 1][...]                       # (L, 1), f32
        z = jnp.tanh(
            jnp.dot(W, h.astype(compute_dtype), preferred_element_type=jnp.float32)
            + b
        )
        h = u + z * d

    wl = wlast_ref[...].astype(compute_dtype)                 # (out, L)
    out_ref[...] = (
        jnp.dot(wl, h.astype(compute_dtype), preferred_element_type=jnp.float32)
        + blast_ref[...]
    ).astype(out_ref.dtype)


def _round_up(n, m):
    return ((n + m - 1) // m) * m


def modified_mlp_forward(x, W_u, b_u, W_v, b_v, Ws, bs, *, b_tile=512,
                         compute_dtype=jnp.float32):
    """Pallas forward for ModifiedMLP.

    x: (input_size, batch); Ws/bs: lists of length n_layers (Ws[-1] is the
    output projection).  Returns (output_size, batch) in float32.
    b_tile: batch tile width (rounded up to a multiple of 128); sweep 512/1024
    in production, smaller on v7x (64 MiB VMEM) for very wide layers.
    compute_dtype: dtype of the matmul operands (f32 accumulation always).
    """
    n_layers = len(Ws)
    assert n_layers >= 2, "ModifiedMLP needs at least 2 layers"
    layer_width = W_u.shape[0]
    input_size = x.shape[0]
    output_size = Ws[-1].shape[0]
    batch = x.shape[1]

    # Fuse W_u, W_v, Ws[0] (they all multiply x) and fold their biases into an
    # extra weight column; the matching ones-row is appended to x below.
    W_fused = jnp.concatenate(
        [
            jnp.concatenate([W_u, b_u], axis=1),
            jnp.concatenate([W_v, b_v], axis=1),
            jnp.concatenate([Ws[0], bs[0]], axis=1),
        ],
        axis=0,
    )  # (3L, input_size + 1)

    lane = 128
    tile = min(_round_up(b_tile, lane), _round_up(batch, lane))
    padded = _round_up(batch, tile)

    x_pad = jnp.pad(x, ((0, 0), (0, padded - batch)))
    x_aug = jnp.concatenate([x_pad, jnp.ones((1, padded), x.dtype)], axis=0)

    hidden = []
    for i in range(1, n_layers - 1):
        hidden.append(Ws[i])
        hidden.append(bs[i])
    n_hidden = n_layers - 2

    inputs = [x_aug, W_fused] + hidden + [Ws[-1], bs[-1]]

    def resident(a):
        # Full-array block, same block every grid step -> DMA'd once, stays in VMEM.
        return pl.BlockSpec(a.shape, lambda i: (0,) * a.ndim)

    in_specs = [pl.BlockSpec((input_size + 1, tile), lambda i: (0, i))]
    in_specs += [resident(a) for a in inputs[1:]]
    out_spec = pl.BlockSpec((output_size, tile), lambda i: (0, i))

    kernel = functools.partial(_modified_mlp_kernel, n_hidden, layer_width,
                               compute_dtype)
    out = pl.pallas_call(
        kernel,
        grid=(padded // tile,),
        out_shape=jax.ShapeDtypeStruct((output_size, padded), jnp.float32),
        in_specs=in_specs,
        out_specs=out_spec,
        compiler_params=pltpu.CompilerParams(
            dimension_semantics=("parallel",)),
    )(*inputs)
    return out[:, :batch]


def _reference_forward(x, W_u, b_u, W_v, b_v, Ws, bs):
    """Pure-JAX reference (mirrors the PyTorch forward)."""
    u = jnp.tanh(W_u @ x + b_u)
    v = jnp.tanh(W_v @ x + b_v)
    h = x
    n_layers = len(Ws)
    for i in range(n_layers - 1):
        z = jnp.tanh(Ws[i] @ h + bs[i])
        h = (1.0 - z) * u + z * v
    return Ws[-1] @ h + bs[-1]


def init_params(key, layer_width, n_layers, input_size, output_size):
    """Deterministic synthetic init matching the PyTorch __init__ shapes/scales."""
    keys = jax.random.split(key, 4 + 2 * n_layers)
    k_iter = iter(keys)

    std0 = jnp.sqrt(2.0 / (input_size + layer_width))
    W_u = std0 * jax.random.normal(next(k_iter), (layer_width, input_size), jnp.float32)
    W_v = std0 * jax.random.normal(next(k_iter), (layer_width, input_size), jnp.float32)
    b_u = std0 * jax.random.normal(next(k_iter), (layer_width, 1), jnp.float32)
    b_v = std0 * jax.random.normal(next(k_iter), (layer_width, 1), jnp.float32)

    Ws, bs = [], []
    Ws.append(std0 * jax.random.normal(next(k_iter), (layer_width, input_size), jnp.float32))
    bs.append(std0 * jax.random.normal(next(k_iter), (layer_width, 1), jnp.float32))
    std_h = jnp.sqrt(1.0 / layer_width)
    for _ in range(1, n_layers - 1):
        Ws.append(std_h * jax.random.normal(next(k_iter), (layer_width, layer_width), jnp.float32))
        bs.append(std_h * jax.random.normal(next(k_iter), (layer_width, 1), jnp.float32))
    std_o = jnp.sqrt(2.0 / (layer_width + output_size))
    Ws.append(std_o * jax.random.normal(next(k_iter), (output_size, layer_width), jnp.float32))
    bs.append(std_o * jax.random.normal(next(k_iter), (output_size, 1), jnp.float32))

    return W_u, b_u, W_v, b_v, Ws, bs


if __name__ == "__main__":
    layer_width = 32
    n_layers = 4
    input_size = 4
    output_size = 2
    batch = 300  # not a multiple of the tile -> exercises padding + multi-step grid

    key = jax.random.PRNGKey(0)
    k_params, k_x = jax.random.split(key)
    W_u, b_u, W_v, b_v, Ws, bs = init_params(
        k_params, layer_width, n_layers, input_size, output_size
    )
    x = jax.random.normal(k_x, (input_size, batch), jnp.float32)

    # b_tile=128 keeps the demo small while still using a 3-step pipelined grid;
    # production PINN batches would use the default (512+).
    out = modified_mlp_forward(x, W_u, b_u, W_v, b_v, Ws, bs, b_tile=128)
    out = jax.block_until_ready(out)

    ref = _reference_forward(x, W_u, b_u, W_v, b_v, Ws, bs)
    assert out.shape == (output_size, batch)
    assert jnp.allclose(out, ref, atol=1e-5, rtol=1e-5), "mismatch vs pure-JAX reference"

    print("KERNEL_OK")
</pallas_src>

<mosaic_0001>
module attributes {stable_mosaic.version = 11 : i64} {
  func.func @_modified_mlp_kernel(%arg0: i32, %arg1: memref<5x128xf32, #tpu.memory_space<vmem>>, %arg2: memref<96x5xf32, #tpu.memory_space<vmem>>, %arg3: memref<32x32xf32, #tpu.memory_space<vmem>>, %arg4: memref<32x1xf32, #tpu.memory_space<vmem>>, %arg5: memref<32x32xf32, #tpu.memory_space<vmem>>, %arg6: memref<32x1xf32, #tpu.memory_space<vmem>>, %arg7: memref<2x32xf32, #tpu.memory_space<vmem>>, %arg8: memref<2x1xf32, #tpu.memory_space<vmem>>, %arg9: memref<2x128xf32, #tpu.memory_space<vmem>>) attributes {dimension_semantics = [#tpu.dimension_semantics<parallel>], iteration_bounds = array<i64: 3>, scalar_prefetch = 0 : i64, scratch_operands = 0 : i64, tpu.core_type = #tpu.core_type<tc>, window_params = [{transform_indices = @transform_0, window_bounds = array<i64: 5, 128>}, {pipeline_mode = #tpu.pipeline_mode<synchronous>, transform_indices = @transform_1, window_bounds = array<i64: 96, 5>}, {pipeline_mode = #tpu.pipeline_mode<synchronous>, transform_indices = @transform_2, window_bounds = array<i64: 32, 32>}, {pipeline_mode = #tpu.pipeline_mode<synchronous>, transform_indices = @transform_3, window_bounds = array<i64: 32, 1>}, {pipeline_mode = #tpu.pipeline_mode<synchronous>, transform_indices = @transform_4, window_bounds = array<i64: 32, 32>}, {pipeline_mode = #tpu.pipeline_mode<synchronous>, transform_indices = @transform_5, window_bounds = array<i64: 32, 1>}, {pipeline_mode = #tpu.pipeline_mode<synchronous>, transform_indices = @transform_6, window_bounds = array<i64: 2, 32>}, {pipeline_mode = #tpu.pipeline_mode<synchronous>, transform_indices = @transform_7, window_bounds = array<i64: 2, 1>}, {transform_indices = @transform_8, window_bounds = array<i64: 2, 128>}]} {
    %c0 = arith.constant 0 : index
    %c0_0 = arith.constant 0 : index
    %0 = vector.load %arg1[%c0, %c0_0] : memref<5x128xf32, #tpu.memory_space<vmem>>, vector<5x128xf32>
    %c0_1 = arith.constant 0 : index
    %c0_2 = arith.constant 0 : index
    %1 = vector.load %arg2[%c0_1, %c0_2] : memref<96x5xf32, #tpu.memory_space<vmem>>, vector<96x5xf32>
    %cst = arith.constant dense<0.000000e+00> : vector<96x128xf32>
    %2 = tpu.matmul %1, %0, %cst {dimension_numbers = #tpu.dot_dimension_numbers<[1], [0], [0], [1], [0, 0, 1, 1], [], []>} : vector<96x5xf32>, vector<5x128xf32>, vector<96x128xf32> -> vector<96x128xf32>
    %3 = math.tanh %2 : vector<96x128xf32>
    %4 = vector.extract_strided_slice %3 {offsets = [0, 0], sizes = [32, 128], strides = [1, 1]} : vector<96x128xf32> to vector<32x128xf32>
    %5 = vector.extract_strided_slice %3 {offsets = [32, 0], sizes = [32, 128], strides = [1, 1]} : vector<96x128xf32> to vector<32x128xf32>
    %6 = vector.extract_strided_slice %3 {offsets = [64, 0], sizes = [32, 128], strides = [1, 1]} : vector<96x128xf32> to vector<32x128xf32>
    %7 = arith.subf %5, %4 : vector<32x128xf32>
    %8 = arith.mulf %6, %7 : vector<32x128xf32>
    %9 = arith.addf %4, %8 : vector<32x128xf32>
    %c0_3 = arith.constant 0 : index
    %c0_4 = arith.constant 0 : index
    %10 = vector.load %arg3[%c0_3, %c0_4] : memref<32x32xf32, #tpu.memory_space<vmem>>, vector<32x32xf32>
    %c0_5 = arith.constant 0 : index
    %c0_6 = arith.constant 0 : index
    %11 = vector.load %arg4[%c0_5, %c0_6] : memref<32x1xf32, #tpu.memory_space<vmem>>, vector<32x1xf32>
    %cst_7 = arith.constant dense<0.000000e+00> : vector<32x128xf32>
    %12 = tpu.matmul %10, %9, %cst_7 {dimension_numbers = #tpu.dot_dimension_numbers<[1], [0], [0], [1], [0, 0, 1, 1], [], []>} : vector<32x32xf32>, vector<32x128xf32>, vector<32x128xf32> -> vector<32x128xf32>
    %13 = vector.broadcast %11 : vector<32x1xf32> to vector<32x128xf32>
    %14 = arith.addf %12, %13 : vector<32x128xf32>
    %15 = math.tanh %14 : vector<32x128xf32>
    %16 = arith.mulf %15, %7 : vector<32x128xf32>
    %17 = arith.addf %4, %16 : vector<32x128xf32>
    %c0_8 = arith.constant 0 : index
    %c0_9 = arith.constant 0 : index
    %18 = vector.load %arg5[%c0_8, %c0_9] : memref<32x32xf32, #tpu.memory_space<vmem>>, vector<32x32xf32>
    %c0_10 = arith.constant 0 : index
    %c0_11 = arith.constant 0 : index
    %19 = vector.load %arg6[%c0_10, %c0_11] : memref<32x1xf32, #tpu.memory_space<vmem>>, vector<32x1xf32>
    %cst_12 = arith.constant dense<0.000000e+00> : vector<32x128xf32>
    %20 = tpu.matmul %18, %17, %cst_12 {dimension_numbers = #tpu.dot_dimension_numbers<[1], [0], [0], [1], [0, 0, 1, 1], [], []>} : vector<32x32xf32>, vector<32x128xf32>, vector<32x128xf32> -> vector<32x128xf32>
    %21 = vector.broadcast %19 : vector<32x1xf32> to vector<32x128xf32>
    %22 = arith.addf %20, %21 : vector<32x128xf32>
    %23 = math.tanh %22 : vector<32x128xf32>
    %24 = arith.mulf %23, %7 : vector<32x128xf32>
    %25 = arith.addf %4, %24 : vector<32x128xf32>
    %c0_13 = arith.constant 0 : index
    %c0_14 = arith.constant 0 : index
    %26 = vector.load %arg7[%c0_13, %c0_14] : memref<2x32xf32, #tpu.memory_space<vmem>>, vector<2x32xf32>
    %cst_15 = arith.constant dense<0.000000e+00> : vector<2x128xf32>
    %27 = tpu.matmul %26, %25, %cst_15 {dimension_numbers = #tpu.dot_dimension_numbers<[1], [0], [0], [1], [0, 0, 1, 1], [], []>} : vector<2x32xf32>, vector<32x128xf32>, vector<2x128xf32> -> vector<2x128xf32>
    %c0_16 = arith.constant 0 : index
    %c0_17 = arith.constant 0 : index
    %28 = vector.load %arg8[%c0_16, %c0_17] : memref<2x1xf32, #tpu.memory_space<vmem>>, vector<2x1xf32>
    %29 = vector.broadcast %28 : vector<2x1xf32> to vector<2x128xf32>
    %30 = arith.addf %27, %29 : vector<2x128xf32>
    %c0_18 = arith.constant 0 : index
    %c0_19 = arith.constant 0 : index
    %31 = vector.load %arg9[%c0_18, %c0_19] : memref<2x128xf32, #tpu.memory_space<vmem>>, vector<2x128xf32>
    tpu.vector_store %arg9[%c0_18, %c0_19], %30 {strides = array<i32>} : memref<2x128xf32, #tpu.memory_space<vmem>>, vector<2x128xf32>,
    return
  }
  func.func @transform_0(%arg0: i32) -> (i32, i32) {
    %c0_i32 = arith.constant 0 : i32
    %c0_i32_0 = arith.constant 0 : i32
    return %c0_i32, %arg0 : i32, i32
  }
  func.func @transform_1(%arg0: i32) -> (i32, i32) {
    %c0_i32 = arith.constant 0 : i32
    %c0_i32_0 = arith.constant 0 : i32
    %c0_i32_1 = arith.constant 0 : i32
    return %c0_i32, %c0_i32_0 : i32, i32
  }
  func.func @transform_2(%arg0: i32) -> (i32, i32) {
    %c0_i32 = arith.constant 0 : i32
    %c0_i32_0 = arith.constant 0 : i32
    %c0_i32_1 = arith.constant 0 : i32
    return %c0_i32, %c0_i32_0 : i32, i32
  }
  func.func @transform_3(%arg0: i32) -> (i32, i32) {
    %c0_i32 = arith.constant 0 : i32
    %c0_i32_0 = arith.constant 0 : i32
    %c0_i32_1 = arith.constant 0 : i32
    return %c0_i32, %c0_i32_0 : i32, i32
  }
  func.func @transform_4(%arg0: i32) -> (i32, i32) {
    %c0_i32 = arith.constant 0 : i32
    %c0_i32_0 = arith.constant 0 : i32
    %c0_i32_1 = arith.constant 0 : i32
    return %c0_i32, %c0_i32_0 : i32, i32
  }
  func.func @transform_5(%arg0: i32) -> (i32, i32) {
    %c0_i32 = arith.constant 0 : i32
    %c0_i32_0 = arith.constant 0 : i32
    %c0_i32_1 = arith.constant 0 : i32
    return %c0_i32, %c0_i32_0 : i32, i32
  }
  func.func @transform_6(%arg0: i32) -> (i32, i32) {
    %c0_i32 = arith.constant 0 : i32
    %c0_i32_0 = arith.constant 0 : i32
    %c0_i32_1 = arith.constant 0 : i32
    return %c0_i32, %c0_i32_0 : i32, i32
  }
  func.func @transform_7(%arg0: i32) -> (i32, i32) {
    %c0_i32 = arith.constant 0 : i32
    %c0_i32_0 = arith.constant 0 : i32
    %c0_i32_1 = arith.constant 0 : i32
    return %c0_i32, %c0_i32_0 : i32, i32
  }
  func.func @transform_8(%arg0: i32) -> (i32, i32) {
    %c0_i32 = arith.constant 0 : i32
    %c0_i32_0 = arith.constant 0 : i32
    return %c0_i32, %arg0 : i32, i32
  }
}

</mosaic_0001>

<bundles_post_ra>
// kernel: tpu_custom_call.1
= control target key start
LH: loop header
LB: loop body
LE: loop exit
PB: predicated region body
PF: predicated region fallthrough
CT: control target
= control target key end

     0   :  { %13 = vsyncpa [#allocation3], 0  ;;  %s1501_s0 = inlined_call_operand.vmem [shape: f32[5,384], index: 0, kind: input, shape index: {}]   ;;  %s1502_s1 = inlined_call_operand.vmem [shape: f32[96,5], index: 1, kind: input, shape index: {}]   ;;  %s1503_s2 = inlined_call_operand.vmem [shape: f32[32,32], index: 2, kind: input, shape index: {}]   ;;  %s1504_s3 = inlined_call_operand.vmem [shape: f32[32,1], index: 3, kind: input, shape index: {}]   ;;  %s1505_s4 = inlined_call_operand.vmem [shape: f32[32,32], index: 4, kind: input, shape index: {}]   ;;  %s1506_s5 = inlined_call_operand.vmem [shape: f32[32,1], index: 5, kind: input, shape index: {}]   ;;  %s1507_s6 = inlined_call_operand.vmem [shape: f32[2,32], index: 6, kind: input, shape index: {}]   ;;  %s1508_s7 = inlined_call_operand.vmem [shape: f32[2,1], index: 7, kind: input, shape index: {}]   ;;  %s1509_s8 = inlined_call_operand.hbm [shape: f32[2,384], index: 8, kind: output, shape index: {}]  }
   0x1   :  { %15 = vsyncpa [#allocation3 + $0x1], 0  ;;  %s1253_s27 = smov 0   ;;  %s1255_s28 = smov 0  }
   0x2   :  { %s1257_s29 = smov 0   ;;  %s1259_s30 = smov 0  }
   0x3 LB: > { %s1274_s9 = sadd.s32 4294967295, %s1202_s30   ;;  %s933_s10 = sadd.s32 4294967294, %s1202_s30   ;;  %s1202_s30 = sphi %s1259_s30, %s1515_s30   ;;  %s1198_s29 = sphi %s1257_s29, %s1514_s29   ;;  %s1194_s28 = sphi %s1255_s28, %s1513_s28   ;;  %s1190_s27 = sphi %s1253_s27, %s1512_s27  }
   0x4   : > { %s1278_s11 = sadd.s32 1, %s1202_s30   ;;  %s201_s12 = sadd.s32 1, %s1198_s29 }
   0x5   : > { %s198_s13 = ssub.s32 %s1202_s30, %s1278_s11  ;;  %p211_p0 = scmp.ne.s32.totalorder %s1198_s29, %s1194_s28 }
   0x6   : > { %p199_p1 = scmp.eq.s32.totalorder %s198_s13, 0  ;;  %p212_p2 = scmp.eq.s32.totalorder %s1274_s9, 2 }
   0x7   : > { %p217_p3 = scmp.ne.s32.totalorder %s1194_s28, %s1190_s27  ;;  %p218_p4 = scmp.eq.s32.totalorder %s933_s10, 2 }
   0x8   : > { %s1289_s14 = scalar_select %p199_p1, %s1198_s29, %s201_s12  }
   0x9   : > { %p1291_p5 = por %p212_p2, %p211_p0  ;;  %p1295_p6 = por %p218_p4, %p217_p3 }
   0xa   : > { %p936_p7 = scmp.ge.s32.totalorder %s1202_s30, 1  ;;  %p264_p8 = scmp.lt.s32.totalorder %s1202_s30, 4 }
   0xc   : > { %p265_p9 = pnand %p936_p7, %p264_p8 }
   0xd   : > { %p297_p10 = scmp.lt.s32.totalorder (!%p265_p9), %s1274_s9, 2  ;;  %s294_s17 = sand.u32 (!%p265_p9), 1, %s1194_s28  }
   0xe   : > { %268 = sbr.rel (%p265_p9) target bundleno = 922 (0x39a), region = 52  ;;  %s937_s18 = sshll.u32 (!%p265_p9), %s294_s17, 1 }
   0xf   : > { %s861_s25 = scalar_lea.sflag (!%p265_p9), [#allocation3], %s294_s17 }
  0x13   : > { %v302_v0 = vld [vmem:[%s1502_s1] sm:$0xff]  ;;  %vm314_vm0 = vcmask 39936   ;;  %s298_s19 = scalar_select %p297_p10, %s1274_s9, 2  ;;  %vm351_vm1 = vcmask 1044480   ;;  %v303_v2 = vld [vmem:[%s1502_s1 + $0x8] sm:$0xff]  ;;  %v304_v3 = vld [vmem:[%s1502_s1 + $0x10] sm:$0xff] }
  0x14   : > { %1001 = vmatprep.mubr.msk.f32.mxu0 %vm314_vm0, %v302_v0  ;;  %v305_v4 = vld [vmem:[%s1502_s1 + $0x18] sm:$0xff]  ;;  %v306_v5 = vld [vmem:[%s1502_s1 + $0x20] sm:$0xff]  ;;  %v307_v6 = vld [vmem:[%s1502_s1 + $0x28] sm:$0xff]  ;;  %vm532_vm2 = vcmask 261120   ;;  %v1204_v15 = vmov 0   ;;  %vm1206_vm3 = vmmov 0  }
  0x15   : > { %s938_s20 = sshll.u32 %s298_s19, 3  ;;  %v308_v7 = vld [vmem:[%s1502_s1 + $0x30] sm:$0xff]  ;;  %v309_v8 = vld [vmem:[%s1502_s1 + $0x38] sm:$0xff]  ;;  %v310_v9 = vld [vmem:[%s1502_s1 + $0x40] sm:$0xff]  ;;  %1100 = vset.pattern.permute.xlu0 %v1204_v15  ;;  %1101 = vset.pattern.permute.xlu1 %v1204_v15  ;;  %s962_s19 = sshll.u32 %s1274_s9, 5 }
  0x16   : > { %s300_s23 = scalar_lea.vmem %s1501_s0, %s938_s20  ;;  %v311_v10 = vld [vmem:[%s1502_s1 + $0x48] sm:$0xff]  ;;  %v312_v11 = vld [vmem:[%s1502_s1 + $0x50] sm:$0xff]  ;;  %v313_v12 = vld [vmem:[%s1502_s1 + $0x58] sm:$0xff]  ;;  %s296_s20 = scalar_lea.vmem [#allocation2], %s937_s18 }
  0x17   : > { %v301_v1 = vld [vmem:[%s300_s23] sm:$0x1f]  ;;  %v511_v14 = vld [vmem:[%s1504_s3 + $0x18] sm:$0xff]  ;;  %v509_v16 = vld [vmem:[%s1504_s3 + $0x8] sm:$0xff]  ;;  %s874_s21 = sshll.u32 %s296_s20, 4  ;;  %s1466_s24 = scalar_lea.hbm %s1509_s8, %s962_s19  ;;  %s875_s21 = int_to_ptr.vmem [resolvable:$true] %s874_s21 }
  0x18   : > { %999 = vmatprep.subr.msk.mxu0 %vm351_vm1, %v301_v1  ;;  %v504_v13 = vld [vmem:[%s1503_s2] sm:$0xff]  ;;  %529 = vperm.xlu0 %1100, %v511_v14   ;;  %v510_v17 = vld [vmem:[%s1504_s3 + $0x10] sm:$0xff]  ;;  %v649_v19 = vld [vmem:[%s1506_s5 + $0x18] sm:$0xff]  ;;  %s1142_s26 = scalar_lea.vmem %s875_s21, 32  ;;  %s1207_s9 = smov [#allocation2]  }
  0x19   : > { %1000 = vmatpush3.msk.msra.mxu0 %vm351_vm1, %v301_v1  ;;  %1027 = vmatprep.mubr.msk.f32.mxu1 %vm532_vm2, %v504_v13  ;;  %v508_v18 = vld [vmem:[%s1504_s3] sm:$0xff]  ;;  %v648_v20 = vld [vmem:[%s1506_s5 + $0x10] sm:$0xff]  ;;  %v647_v21 = vld [vmem:[%s1506_s5 + $0x8] sm:$0xff]  ;;  %p1143_p11 = scmp.ne.s32.totalorder %s875_s21, %s1142_s26  ;;  %s1146_s10 = sshll.u32 %s1207_s9, 4  ;;  %s1147_s10 = int_to_ptr.vmem [resolvable:$false] %s1146_s10 }
  0x1a   : > { %1002 = vmatmul.mubr.msk.f32.vlgmr.msra.gmra.mxu0 %vm314_vm0, %v303_v2  ;;  %519 = vperm.xlu1 %1101, %v509_v16   ;;  %v646_v22 = vld [vmem:[%s1506_s5] sm:$0xff]  ;;  %v505_v60 = vld [vmem:[%s1503_s2 + $0x8] sm:$0xff]  ;;  %v506_v61 = vld [vmem:[%s1503_s2 + $0x10] sm:$0xff]  ;;  %s1148_s12 = scalar_lea.vmem %s1147_s10, 64  ;;  %p1149_p0 = scmp.lt.s32.totalorder %s875_s21, %s1147_s10 }
  0x1b   : > { %1004 = vmatprep.mubr.msk.f32.mxu0 %vm314_vm0, %v304_v3  ;;  %v780_v23 = vld [vmem:[%s1508_s7] sm:$0x3]  ;;  %v507_v62 = vld [vmem:[%s1503_s2 + $0x18] sm:$0xff]  ;;  %p1144_p12 = pnand %p1143_p11, %p1291_p5  ;;  %p1150_p1 = scmp.lt.s32.totalorder %s1148_s12, %s1142_s26 }
  0x1c   : > { %524 = vperm.xlu0 %1100, %v510_v17   ;;  %v642_v63 = vld [vmem:[%s1505_s4] sm:$0xff] }
  0x1d   : > { %p1145_p13 = pneg %p1144_p12  ;;  %p1151_p2 = por %p1150_p1, %p1149_p0 }
  0x1e   : > { %1005 = vmatmul.mubr.msk.f32.gmra.mxu0 %vm314_vm0, %v305_v4  ;;  %514 = vperm.xlu1 %1101, %v508_v18  }
  0x1f   : > { %1007 = vmatprep.mubr.msk.f32.mxu0 %vm314_vm0, %v306_v5  ;;  %p1152_p3 = pnand %p1151_p2, %p1145_p13 }
  0x20   : > { %667 = vperm.xlu0 %1100, %v649_v19  }
  0x22   : > { %1008 = vmatmul.mubr.msk.f32.gmra.mxu0 %vm314_vm0, %v307_v6  ;;  %662 = vperm.xlu1 %1101, %v648_v20  }
  0x23   : > { %1010 = vmatprep.mubr.msk.f32.mxu0 %vm314_vm0, %v308_v7 }
  0x24   : > { %657 = vperm.xlu0 %1100, %v647_v21  }
  0x26   : > { %1011 = vmatmul.mubr.msk.f32.gmra.mxu0 %vm314_vm0, %v309_v8  ;;  %652 = vperm.xlu1 %1101, %v646_v22  }
  0x27   : > { %1013 = vmatprep.mubr.msk.f32.mxu0 %vm314_vm0, %v310_v9 }
  0x28   : > { %783 = vperm.xlu0 %1100, %v780_v23  }
  0x2a   : > { %1014 = vmatmul.mubr.msk.f32.gmra.mxu0 %vm314_vm0, %v311_v10 }
  0x2b   : > { %1016 = vmatprep.mubr.msk.f32.mxu0 %vm314_vm0, %v312_v11 }
  0x2e   : > { %1017 = vmatmul.mubr.msk.f32.gmra.mxu0 %vm314_vm0, %v313_v12 }
  0x93   : > { %v530_v1 = vpop.permute.xlu0 %529 }
  0x95   : > { %v520_v0 = vpop.permute.xlu1 %519 }
  0x97   : > { %v525_v9 = vpop.permute.xlu0 %524 }
  0x99   : > { %v515_v5 = vpop.permute.xlu1 %514 }
  0xda   : > { %v1003_v24 = vpop.f32.mrf.mxu0 }
  0xdb   : > { %1102 = vtanh.f32 %v1003_v24  ;;  %v643_v24 = vld [vmem:[%s1505_s4 + $0x8] sm:$0xff] }
  0xdc   : > { %v421_v25 = vpop.f32.mrf.mxu0 }
  0xdd   : > { %1104 = vtanh.f32 %v421_v25  ;;  %v644_v25 = vld [vmem:[%s1505_s4 + $0x10] sm:$0xff] }
  0xde   : > { %v1006_v26 = vpop.f32.mrf.mxu0 }
  0xdf   : > { %1106 = vtanh.f32 %v1006_v26  ;;  %v645_v26 = vld [vmem:[%s1505_s4 + $0x18] sm:$0xff] }
  0xe0   : > { %v431_v27 = vpop.f32.mrf.mxu0 }
  0xe1   : > { %1108 = vtanh.f32 %v431_v27  ;;  %v1205_v27 = vmov 0.0  }
  0xe2   : > { %v1009_v28 = vpop.f32.mrf.mxu0 }
  0xe3   : > { %1110 = vtanh.f32 %v1009_v28  ;;  %v668_v28 = vpop.permute.xlu0 %667 }
  0xe4   : > { %v441_v29 = vpop.f32.mrf.mxu0 }
  0xe6   : > { %v1012_v30 = vpop.f32.mrf.mxu0 }
  0xe7   : > { %1112 = vtanh.f32 %v1012_v30 }
  0xe8   : > { %v451_v31 = vpop.f32.mrf.mxu0  ;;  %1114 = vtanh.f32 %v441_v29  ;;  %v1385_v36 = vpop.eup %1102 }
  0xe9   : > { %1116 = vtanh.f32 %v451_v31  ;;  %v663_v29 = vpop.permute.xlu1 %662  ;;  %v658_v31 = vpop.permute.xlu0 %657 }
  0xea   : > { %v1015_v32 = vpop.f32.mrf.mxu0  ;;  %v1387_v37 = vpop.eup %1104 }
  0xeb   : > { %1118 = vtanh.f32 %v1015_v32 }
  0xec   : > { %v461_v33 = vpop.f32.mrf.mxu0  ;;  %v1389_v38 = vpop.eup %1106 }
  0xee   : > { %v1018_v34 = vpop.f32.mrf.mxu0  ;;  %v1391_v39 = vpop.eup %1108 }
  0xef   : > { %1120 = vtanh.f32 %v1018_v34  ;;  %v653_v34 = vpop.permute.xlu1 %652 }
  0xf0   : > { %1122 = vtanh.f32 %v461_v33  ;;  %v471_v35 = vpop.f32.mrf.mxu0  ;;  %v1111_v40 = vpop.eup %1110 }
  0xf1   : > { %1124 = vtanh.f32 %v471_v35  ;;  %v1401_v50 = vsub.f32 %v1111_v40, %v1385_v36 }
  0xf4   : > { %v1113_v41 = vpop.eup %1112 }
  0xf5   : > { %v1115_v42 = vpop.eup %1114  ;;  %v1394_v45 = vsub.f32 %v1113_v41, %v1389_v38 }
  0xf6   : > { %v1117_v43 = vpop.eup %1116  ;;  %v1407_v55 = vsub.f32 %v1115_v42, %v1387_v37 }
  0xf7   : > { %v1398_v49 = vsub.f32 %v1117_v43, %v1391_v39 }
  0xf8   : > { %v1119_v44 = vpop.eup %1118 }
  0xf9   : > { %v497_v54 = vmul.f32 %v1119_v44, %v1401_v50 }
  0xfb   : > { %v501_v58 = vadd.f32 %v1385_v36, %v497_v54 }
  0xfc   : > { %v1121_v46 = vpop.eup %1120 }
  0xfd   : > { %v1123_v47 = vpop.eup %1122  ;;  %v499_v48 = vmul.f32 %v1121_v46, %v1394_v45 }
  0xfe   : > { %v1125_v51 = vpop.eup %1124  ;;  %v496_v57 = vmul.f32 %v1123_v47, %v1407_v55 }
  0xff   : > { %v503_v52 = vadd.f32 %v1389_v38, %v499_v48  ;;  %v498_v53 = vmul.f32 %v1125_v51, %v1398_v49 }
 0x100   : > { %v500_v59 = vadd.f32 %v1387_v37, %v496_v57 }
 0x101   : > { %1019 = vmatprep.subr.mxu1 %v503_v52  ;;  %v502_v56 = vadd.f32 %v1391_v39, %v498_v53 }
 0x102   : > { %1020 = vmatpush3.msra.mxu1 %v503_v52 }
 0x103   : > { %1021 = vmatprep.subr.mxu1 %v502_v56 }
 0x104   : > { %1022 = vmatpush3.msra.mxu1 %v502_v56 }
 0x105   : > { %1023 = vmatprep.subr.mxu1 %v501_v58 }
 0x106   : > { %1024 = vmatpush3.msra.mxu1 %v501_v58 }
 0x107   : > { %1025 = vmatprep.subr.mxu1 %v500_v59 }
 0x108   : > { %1026 = vmatpush3.msra.mxu1 %v500_v59 }
 0x109   : > { %1028 = vmatmul.mubr.msk.f32.vlgmr.msra.gmra.mxu1 %vm532_vm2, %v505_v60 }
 0x10a   : > { %1030 = vmatprep.mubr.msk.f32.mxu1 %vm532_vm2, %v506_v61 }
 0x10d   : > { %1031 = vmatmul.mubr.msk.f32.gmra.mxu1 %vm532_vm2, %v507_v62 }
 0x10e   : > { %1041 = vmatprep.mubr.msk.f32.mxu1 %vm532_vm2, %v642_v63 }
 0x1c9   : > { %v1029_v2 = vpop.f32.mrf.mxu1 }
 0x1ca   : > { %v617_v3 = vadd.f32 %v1029_v2, %v520_v0 }
 0x1cb   : > { %v611_v4 = vpop.f32.mrf.mxu1 }
 0x1cc   : > { %v612_v6 = vadd.f32 %v611_v4, %v515_v5  ;;  %1126 = vtanh.f32 %v617_v3 }
 0x1cd   : > { %v1032_v7 = vpop.f32.mrf.mxu1 }
 0x1ce   : > { %v627_v8 = vadd.f32 %v1032_v7, %v530_v1 }
 0x1cf   : > { %v621_v10 = vpop.f32.mrf.mxu1 }
 0x1d0   : > { %1128 = vtanh.f32 %v627_v8  ;;  %v622_v11 = vadd.f32 %v621_v10, %v525_v9 }
 0x1d1   : > { %1130 = vtanh.f32 %v612_v6 }
 0x1d2   : > { %1132 = vtanh.f32 %v622_v11 }
 0x1d9   : > { %v1127_v12 = vpop.eup %1126 }
 0x1da   : > { %v635_v19 = vmul.f32 %v1127_v12, %v1401_v50 }
 0x1dc   : > { %v639_v22 = vadd.f32 %v1385_v36, %v635_v19 }
 0x1dd   : > { %v1129_v13 = vpop.eup %1128 }
 0x1de   : > { %v1131_v14 = vpop.eup %1130  ;;  %v637_v15 = vmul.f32 %v1129_v13, %v1394_v45 }
 0x1df   : > { %v1133_v16 = vpop.eup %1132  ;;  %v634_v21 = vmul.f32 %v1131_v14, %v1407_v55 }
 0x1e0   : > { %v641_v17 = vadd.f32 %v1389_v38, %v637_v15  ;;  %v636_v18 = vmul.f32 %v1133_v16, %v1398_v49 }
 0x1e1   : > { %v638_v23 = vadd.f32 %v1387_v37, %v634_v21 }
 0x1e2   : > { %1033 = vmatprep.subr.mxu1 %v641_v17  ;;  %v640_v20 = vadd.f32 %v1391_v39, %v636_v18 }
 0x1e3   : > { %1034 = vmatpush3.msra.mxu1 %v641_v17 }
 0x1e4   : > { %1035 = vmatprep.subr.mxu1 %v640_v20 }
 0x1e5   : > { %1036 = vmatpush3.msra.mxu1 %v640_v20 }
 0x1e6   : > { %1037 = vmatprep.subr.mxu1 %v639_v22 }
 0x1e7   : > { %1038 = vmatpush3.msra.mxu1 %v639_v22 }
 0x1e8   : > { %1039 = vmatprep.subr.mxu1 %v638_v23 }
 0x1e9   : > { %1040 = vmatpush3.msra.mxu1 %v638_v23 }
 0x1ea   : > { %1042 = vmatmul.mubr.msk.f32.vlgmr.msra.gmra.mxu1 %vm532_vm2, %v643_v24  ;;  %1047 = vmatprep.subr.mxu1 %v1205_v27 }
 0x1eb   : > { %1044 = vmatprep.mubr.msk.f32.mxu1 %vm532_vm2, %v644_v25 }
 0x1ee   : > { %1045 = vmatmul.mubr.msk.f32.gmra.mxu1 %vm532_vm2, %v645_v26 }
 0x1ef   : > { %1055 = vmatprep.mubr.msk.f32.mxu1 %vm1206_vm3, %v1205_v27 }
 0x2aa   : > { %v1043_v30 = vpop.f32.mrf.mxu1 }
 0x2ab   : > { %v754_v32 = vadd.f32 %v1043_v30, %v658_v31 }
 0x2ac   : > { %v748_v33 = vpop.f32.mrf.mxu1 }
 0x2ad   : > { %v749_v35 = vadd.f32 %v748_v33, %v653_v34  ;;  %1134 = vtanh.f32 %v754_v32 }
 0x2ae   : > { %v1046_v40 = vpop.f32.mrf.mxu1 }
 0x2af   : > { %v764_v41 = vadd.f32 %v1046_v40, %v668_v28 }
 0x2b0   : > { %v758_v42 = vpop.f32.mrf.mxu1 }
 0x2b1   : > { %1136 = vtanh.f32 %v764_v41  ;;  %v759_v43 = vadd.f32 %v758_v42, %v663_v29 }
 0x2b2   : > { %1138 = vtanh.f32 %v749_v35 }
 0x2b3   : > { %1140 = vtanh.f32 %v759_v43 }
 0x2ba   : > { %v1135_v44 = vpop.eup %1134 }
 0x2bb   : > { %v772_v54 = vmul.f32 %v1135_v44, %v1401_v50 }
 0x2bd   : > { %v776_v58 = vadd.f32 %v1385_v36, %v772_v54 }
 0x2be   : > { %v1137_v46 = vpop.eup %1136 }
 0x2bf   : > { %v1139_v47 = vpop.eup %1138  ;;  %v774_v48 = vmul.f32 %v1137_v46, %v1394_v45 }
 0x2c0   : > { %v1141_v51 = vpop.eup %1140  ;;  %v771_v57 = vmul.f32 %v1139_v47, %v1407_v55 }
 0x2c1   : > { %v778_v52 = vadd.f32 %v1389_v38, %v774_v48  ;;  %v773_v53 = vmul.f32 %v1141_v51, %v1398_v49  ;;  %v779_v38 = vld [vmem:[%s1507_s6] sm:$0x3] }
 0x2c2   : > { %v775_v45 = vadd.f32 %v1387_v37, %v771_v57 }
 0x2c3   : > { %1048 = vmatpush3.msra.mxu1 %v778_v52  ;;  %v777_v56 = vadd.f32 %v1391_v39, %v773_v53  ;;  %v784_v39 = vpop.permute.xlu0 %783 }
 0x2c4   : > { %1049 = vmatprep.subr.mxu1 %v1205_v27 }
 0x2c5   : > { %1050 = vmatpush3.msra.mxu1 %v777_v56 }
 0x2c6   : > { %1051 = vmatprep.subr.mxu1 %v1205_v27 }
 0x2c7   : > { %1052 = vmatpush3.msra.mxu1 %v776_v58 }
 0x2c8   : > { %1053 = vmatprep.subr.mxu1 %v1205_v27 }
 0x2c9   : > { %1054 = vmatpush3.msra.mxu1 %v775_v45 }
 0x2ca   : > { %1056 = vmatmul.mubr.msk.f32.vlgmr.msra.gmra.mxu1 %vm532_vm2, %v779_v38 }
 0x38a   : > { %v855_v36 = vpop.f32.mrf.mxu1 }
 0x38b   : > { %v856_v49 = vadd.f32 %v855_v36, %v784_v39 }
 0x38c   : > { %v1057_v37 = vpop.f32.mrf.mxu1 }
 0x38d   : > { %859 = vst [vmem:[%s296_s20] sm:$0x3] %v856_v49 }
 0x38e   : > { %1155 = shalt.err (!%p1152_p3)
}
 0x38f   : > { %s1156_s13 = scalar_lea.hbm %s1466_s24, 32  ;;  %s1160_s19 = scalar_lea.hbm %s1509_s8, 96 }
 0x390   : > { %p1157_p4 = scmp.ne.s32.totalorder %s1466_s24, %s1156_s13  ;;  %p1161_p9 = scmp.lt.s32.totalorder %s1466_s24, %s1509_s8 }
 0x391   : > { %p1162_p10 = scmp.lt.s32.totalorder %s1160_s19, %s1156_s13 }
 0x392   : > { %p1158_p7 = pnand %p1157_p4, %p1291_p5 }
 0x393   : > { %p1163_p11 = por %p1162_p10, %p1161_p9 }
 0x394   : > { %p1159_p8 = pneg %p1158_p7 }
 0x396   : > { %p1164_p12 = pnand %p1163_p11, %p1159_p8 }
 0x398   : > { %1167 = shalt.err (!%p1164_p12)
}
 0x399   : > { %1058 = dma.vmem_to_hbm [thread:$0]  (%p1291_p5), %s875_s21, 32, %s1466_s24, %s861_s25  }
 0x39a PF: > { %p1064_p13 = scmp.ge.s32.totalorder %s1202_s30, 2  ;;  %s886_s23 = sand.u32 1, %s1190_s27  }
 0x39b   : > { %s887_s26 = scalar_lea.sflag [#allocation3], %s886_s23 }
 0x39c   : > { %p1061_p0 = pnand %p1064_p13, %p1295_p6 }
 0x39e   : > { %p1062_p1 = pneg %p1061_p0 }
 0x3a0   : > { %1185 = dma.done.wait (%p1062_p1), %s887_s26, 32  }
 0x3a1   : > { %1187 = vsyncadd (%p1062_p1), %s887_s26, 4294967264  ;;  %p18_p2 = scmp.ge.s32.totalorder %s1278_s11, 5   ;;  %s1512_s27 = smov %s1194_s28 }
 0x3a2   : > { %s1513_s28 = smov %s1198_s29  ;;  %s1514_s29 = smov %s1289_s14 }
 0x3a3   : > { %s1515_s30 = smov %s1278_s11  ;;  %20 = sbr.rel (!%p18_p2) target bundleno = 3 (0x3), region = 87 }
 0x3a8   :  { %892 = vsyncpa [#allocation3], 1 }
 0x3a9   :  { %894 = vsyncpa [#allocation3 + $0x1], 1 }

</bundles_post_ra>
